<compile_context>
chip_gen: v7x
topology: tpu7x:2x2x1
jax: 0.10.0
libtpu: 0.0.40
codegen_flags: <defaults>
</compile_context>

<pallas_src>
import functools

import jax
import jax.numpy as jnp
import numpy as np
from jax.experimental import pallas as pl
from jax.experimental.pallas import tpu as pltpu

TASKS = ["0", "1", "2", "3", "4", "5", "6", "7"]
NUM_TASKS = len(TASKS)
LORA_R = 8
LORA_SHARED_SCALE = 1.0
LORA_TASK_SCALE = [1.0] * NUM_TASKS

_COMPUTE_DTYPE = jnp.bfloat16  # MXU operand dtype; accumulation stays f32.


# ----------------------------------------------------------------------------
# Exact (erf) GELU built from exp/mul/add (Abramowitz–Stegun 7.1.26,
# |err| < 1.5e-7), guaranteed to lower in Mosaic.  exp (and, in-kernel, the
# approximate reciprocal) land on the EUP slot, off the VALU.
# ----------------------------------------------------------------------------
def _gelu_erf(x, *, use_eup_recip=False):
    z = x * 0.7071067811865476
    neg = z < 0.0
    a = jnp.where(neg, -z, z)
    denom = 1.0 + 0.3275911 * a
    t = pl.reciprocal(denom, approx=True) if use_eup_recip else 1.0 / denom
    poly = t * (0.254829592 + t * (-0.284496736 + t * (1.421413741 +
                t * (-1.453152027 + t * 1.061405429))))
    erf_abs = 1.0 - poly * jnp.exp(-a * a)
    erf_z = jnp.where(neg, -erf_abs, erf_abs)
    return 0.5 * x * (1.0 + erf_z)


def _round_up(x, m):
    return (x + m - 1) // m * m


def _vmem_capacity_bytes():
    # Trace-time hardware query; fall back to the smallest (v7x per-core) part.
    try:
        info = pltpu.get_tpu_info()
        cap = getattr(info, "vmem_capacity_bytes", None)
        if cap:
            return int(cap)
    except Exception:
        pass
    return 64 << 20


def _resident_bytes(tm, C, H, Cout, T, r, out_itemsize):
    """Conservative per-core VMEM resident-set estimate for a given token tile."""
    cd_b = jnp.dtype(_COMPUTE_DTYPE).itemsize
    f32_b = 4
    # Grid-invariant operands (weights / LoRA factors / biases).
    weights = cd_b * (C * H + H * Cout + C * (T + 1) * r + r * H + H * r
                      + r * Cout + H * T * r + (T * r) * (T * r) + T * r * Cout)
    weights += f32_b * (H + Cout)
    # Per-tile streamed blocks (input tile + shared & per-task output tiles).
    streamed = cd_b * tm * C + out_itemsize * (T + 1) * tm * Cout
    # In-kernel intermediates (pre1/y1/pre2/u projections), single-buffered.
    interm = (tm * H * (f32_b + 2 * cd_b) + tm * Cout * f32_b
              + tm * (T + 1) * r * (f32_b + cd_b)
              + tm * T * r * (2 * f32_b + cd_b))
    # Double-buffer everything the pipeline touches (conservative: invariant
    # weight blocks are counted double-buffered too).
    return 2 * (weights + streamed) + interm


def _pick_tm(M, resident_fn, budget, requested=None):
    """Largest token tile (multiple of 16 for bf16 sublanes) that fits VMEM."""
    if requested is not None:
        return int(requested)
    cap = max(16, _round_up(M, 16))
    for cand in (1024, 512, 256, 128, 64, 32, 16):
        if cand <= cap and resident_fn(cand) <= budget:
            return cand
    return 16


# ----------------------------------------------------------------------------
# Fused Mlp kernel: one grid step per token tile.
#   fc1 pretrained + merged LoRA-A pass -> shared GELU stream -> fc2 shared
#   stream, then the 8 per-task fc2 outputs via the algebraic decomposition
#   (the per-task hidden streams never exist).
# ----------------------------------------------------------------------------
def _mculora_mlp_kernel(x_ref, w1t_ref, b1_ref, a1_ref, b1s_ref,
                        w2t_ref, b2_ref, a2s_ref, b2s_ref,
                        a2t_ref, c1_ref, b2t_ref,
                        y_ref, ys_ref, *, num_tasks, r):
    f32 = jnp.float32
    cd = w1t_ref.dtype
    x = x_ref[...]                                               # (TM, C) bf16

    # ------------------------------ fc1 ------------------------------
    pre1 = jnp.dot(x, w1t_ref[...], preferred_element_type=f32) + b1_ref[...]
    # One merged LoRA-A pass: columns [0:r] shared, [r + t*r : r + (t+1)*r] task t.
    u1 = jnp.dot(x, a1_ref[...], preferred_element_type=f32).astype(cd)
    lora1_s = jnp.dot(u1[:, :r], b1s_ref[...], preferred_element_type=f32)
    y1 = _gelu_erf(pre1 + lora1_s, use_eup_recip=True)   # GELU on shared stream only
    y1b = y1.astype(cd)

    # ------------------------- fc2, shared stream -------------------------
    pre2 = jnp.dot(y1b, w2t_ref[...], preferred_element_type=f32) + b2_ref[...]
    u2s = jnp.dot(y1b, a2s_ref[...], preferred_element_type=f32).astype(cd)
    y_ref[...] = (pre2 + jnp.dot(u2s, b2s_ref[...], preferred_element_type=f32)
                  ).astype(y_ref.dtype)

    # ------------------------ fc2, per-task streams ------------------------
    #   ys1[t]          = pre1 + u1_t @ B1t[t]^T                 (never formed)
    #   ys1[t] @ A2t^T  = pre1 @ A2t[t]^T + u1_t @ (B1t[t]^T A2t[t]^T)
    # c1_ref holds the block-diagonal of the precomputed (r x r) products.
    pre1b = pre1.astype(cd)
    p = jnp.dot(pre1b, a2t_ref[...], preferred_element_type=f32)      # (TM, T*r)
    corr = jnp.dot(u1[:, r:], c1_ref[...], preferred_element_type=f32)
    u2 = (p + corr).astype(cd)                                        # (TM, T*r)
    for t in range(num_tasks):                                        # static unroll, T = 8
        lora2_t = jnp.dot(u2[:, t * r:(t + 1) * r], b2t_ref[t],
                          preferred_element_type=f32)                 # (TM, Cout)
        ys_ref[t] = (pre2 + lora2_t).astype(ys_ref.dtype)             # task scale folded in B2t


def mculora_mlp_pallas(x2d, params, *, out_dtype=None, tm=None):
    """x2d: (M, C).  Returns shared (M, Cout) and per-task (T, M, Cout) outputs."""
    M, C = x2d.shape
    H = params["W1"].shape[0]
    Cout = params["W2"].shape[0]
    T, r = params["At1"].shape[0], params["At1"].shape[1]
    out_dtype = jnp.dtype(out_dtype or x2d.dtype)
    cd = _COMPUTE_DTYPE
    ss = LORA_SHARED_SCALE
    ts = params["task_scales"]

    # ---- generation-aware tile choice + VMEM budget ----
    capacity = _vmem_capacity_bytes()
    budget = min(int(capacity * 0.85), 100 << 20)   # ~54 MiB on v7x, ~100 MiB on v5e/v6e
    resident = lambda cand: _resident_bytes(cand, C, H, Cout, T, r, out_dtype.itemsize)
    TM = _pick_tm(M, resident, budget, tm)
    M_pad = _round_up(M, TM)
    vmem_limit = int(min(budget, max(32 << 20, resident(TM) + (4 << 20))))

    # ---- host-side glue: pad, transpose, fold scales, merge LoRA factors ----
    xb = x2d if M_pad == M else jnp.pad(x2d, ((0, M_pad - M), (0, 0)))
    xb = xb.astype(cd)
    W1t = jnp.transpose(params["W1"]).astype(cd)                          # (C, H)
    W2t = jnp.transpose(params["W2"]).astype(cd)                          # (H, Cout)
    b1r = params["b1"].reshape(1, H).astype(jnp.float32)
    b2r = params["b2"].reshape(1, Cout).astype(jnp.float32)
    # fc1 LoRA-A factors merged: [shared | task0 | ... | task7] -> (C, (T+1)*r)
    A1cat = jnp.concatenate(
        [jnp.transpose(params["As1"]),
         jnp.transpose(params["At1"], (2, 0, 1)).reshape(C, T * r)],
        axis=1).astype(cd)
    B1sT = (jnp.transpose(params["Bs1"]) * ss).astype(cd)                 # (r, H)
    A2sT = jnp.transpose(params["As2"]).astype(cd)                        # (H, r)
    B2sT = (jnp.transpose(params["Bs2"]) * ss).astype(cd)                 # (r, Cout)
    A2tcat = jnp.transpose(params["At2"], (2, 0, 1)).reshape(H, T * r).astype(cd)
    # C1[t] = ts[t] * B1t[t]^T @ A2t[t]^T  (r, r), assembled block-diagonally.
    C1 = jnp.einsum("thi,tjh->tij", params["Bt1"].astype(jnp.float32),
                    params["At2"].astype(jnp.float32)) * ts[:, None, None]
    eyeT = jnp.eye(T, dtype=jnp.float32)
    C1bd = (eyeT[:, None, :, None] * C1[:, :, None, :]).reshape(T * r, T * r).astype(cd)
    B2tT = (jnp.transpose(params["Bt2"], (0, 2, 1)) * ts[:, None, None]).astype(cd)

    kernel = functools.partial(_mculora_mlp_kernel, num_tasks=T, r=r)
    const2 = lambda i: (0, 0)
    const3 = lambda i: (0, 0, 0)

    y2, ys2 = pl.pallas_call(
        kernel,
        out_shape=(jax.ShapeDtypeStruct((M_pad, Cout), out_dtype),
                   jax.ShapeDtypeStruct((T, M_pad, Cout), out_dtype)),
        grid_spec=pltpu.PrefetchScalarGridSpec(
            num_scalar_prefetch=0,
            grid=(M_pad // TM,),
            in_specs=[
                pl.BlockSpec((TM, C), lambda i: (i, 0)),          # x tile
                pl.BlockSpec((C, H), const2),                     # W1^T
                pl.BlockSpec((1, H), const2),                     # b1
                pl.BlockSpec((C, (T + 1) * r), const2),           # merged fc1 LoRA-A
                pl.BlockSpec((r, H), const2),                     # B1_shared^T (scaled)
                pl.BlockSpec((H, Cout), const2),                  # W2^T
                pl.BlockSpec((1, Cout), const2),                  # b2
                pl.BlockSpec((H, r), const2),                     # A2_shared^T
                pl.BlockSpec((r, Cout), const2),                  # B2_shared^T (scaled)
                pl.BlockSpec((H, T * r), const2),                 # concat A2_task^T
                pl.BlockSpec((T * r, T * r), const2),             # block-diag B1t^T A2t^T
                pl.BlockSpec((T, r, Cout), const3),               # B2_task^T (scaled)
            ],
            out_specs=(
                pl.BlockSpec((TM, Cout), lambda i: (i, 0)),        # shared out
                pl.BlockSpec((T, TM, Cout), lambda i: (0, i, 0)),  # per-task out
            ),
        ),
        compiler_params=pltpu.CompilerParams(
            dimension_semantics=("parallel",),        # M tiles -> 2 TCs on v7x
            vmem_limit_bytes=vmem_limit),
    )(xb, W1t, b1r, A1cat, B1sT, W2t, b2r, A2sT, B2sT, A2tcat, C1bd, B2tT)

    if M_pad != M:
        y2 = y2[:M]
        ys2 = ys2[:, :M]
    return y2, ys2


# ----------------------------------------------------------------------------
# Mlp forward: fc1 -> GELU (shared stream) -> fc2, fully fused.  drop = 0.0.
# ----------------------------------------------------------------------------
def mlp_forward(x, params):
    B, N, C = x.shape
    x2d = x.reshape(B * N, C)
    # out_dtype could be jnp.bfloat16 to halve the final HBM write traffic.
    y2, ys2 = mculora_mlp_pallas(x2d, params, out_dtype=x.dtype)
    Cout = params["W2"].shape[0]
    x_out = y2.reshape(B, N, Cout)
    xs_out = {task: ys2[i].reshape(B, N, Cout) for i, task in enumerate(TASKS)}
    return x_out, xs_out


# ----------------------------------------------------------------------------
# Pure-JAX reference: direct (non-decomposed) MTLoRA-style formulation with
# the same bf16-operand / f32-accumulation numerics, so it independently
# validates the kernel's algebraic rewrite of the per-task path.
# ----------------------------------------------------------------------------
def mlp_ref(x, params):
    cd = _COMPUTE_DTYPE
    ss = LORA_SHARED_SCALE
    ts = params["task_scales"]
    B, N, C = x.shape
    xb = x.reshape(B * N, C).astype(cd)

    pre1 = jnp.dot(xb, jnp.transpose(params["W1"]).astype(cd),
                   preferred_element_type=jnp.float32) + params["b1"].astype(jnp.float32)
    u1s = jnp.dot(xb, jnp.transpose(params["As1"]).astype(cd),
                  preferred_element_type=jnp.float32).astype(cd)
    lora1s = jnp.dot(u1s, (jnp.transpose(params["Bs1"]) * ss).astype(cd),
                     preferred_element_type=jnp.float32)
    y1 = _gelu_erf(pre1 + lora1s)                       # GELU on shared stream only
    y1b = y1.astype(cd)

    pre2 = jnp.dot(y1b, jnp.transpose(params["W2"]).astype(cd),
                   preferred_element_type=jnp.float32) + params["b2"].astype(jnp.float32)
    u2s = jnp.dot(y1b, jnp.transpose(params["As2"]).astype(cd),
                  preferred_element_type=jnp.float32).astype(cd)
    y2 = pre2 + jnp.dot(u2s, (jnp.transpose(params["Bs2"]) * ss).astype(cd),
                        preferred_element_type=jnp.float32)

    ys2 = []
    for t in range(NUM_TASKS):
        u1t = jnp.dot(xb, jnp.transpose(params["At1"][t]).astype(cd),
                      preferred_element_type=jnp.float32).astype(cd)
        lora1t = jnp.dot(u1t, (jnp.transpose(params["Bt1"][t]) * ts[t]).astype(cd),
                         preferred_element_type=jnp.float32)
        xs1t = (pre1 + lora1t).astype(cd)               # NOT activated (matches Mlp.forward)
        u2t = jnp.dot(xs1t, jnp.transpose(params["At2"][t]).astype(cd),
                      preferred_element_type=jnp.float32).astype(cd)
        lora2t = jnp.dot(u2t, (jnp.transpose(params["Bt2"][t]) * ts[t]).astype(cd),
                         preferred_element_type=jnp.float32)
        ys2.append(pre2 + lora2t)

    Cout = params["W2"].shape[0]
    y2 = y2.astype(x.dtype).reshape(B, N, Cout)
    ys2 = jnp.stack(ys2).astype(x.dtype).reshape(NUM_TASKS, B, N, Cout)
    return y2, ys2


# ----------------------------------------------------------------------------
def make_params(key, in_features, hidden_features, out_features):
    # Deterministic synthetic init.  (The real module zero-inits LoRA B
    # matrices; small random values exercise the LoRA paths.)
    ks = jax.random.split(key, 12)
    scale = 0.02
    return {
        "W1": jax.random.normal(ks[0], (hidden_features, in_features), jnp.float32) * scale,
        "b1": jax.random.normal(ks[1], (hidden_features,), jnp.float32) * scale,
        "As1": jax.random.normal(ks[2], (LORA_R, in_features), jnp.float32) * scale,
        "Bs1": jax.random.normal(ks[3], (hidden_features, LORA_R), jnp.float32) * scale,
        "At1": jax.random.normal(ks[4], (NUM_TASKS, LORA_R, in_features), jnp.float32) * scale,
        "Bt1": jax.random.normal(ks[5], (NUM_TASKS, hidden_features, LORA_R), jnp.float32) * scale,
        "W2": jax.random.normal(ks[6], (out_features, hidden_features), jnp.float32) * scale,
        "b2": jax.random.normal(ks[7], (out_features,), jnp.float32) * scale,
        "As2": jax.random.normal(ks[8], (LORA_R, hidden_features), jnp.float32) * scale,
        "Bs2": jax.random.normal(ks[9], (out_features, LORA_R), jnp.float32) * scale,
        "At2": jax.random.normal(ks[10], (NUM_TASKS, LORA_R, hidden_features), jnp.float32) * scale,
        "Bt2": jax.random.normal(ks[11], (NUM_TASKS, out_features, LORA_R), jnp.float32) * scale,
        "task_scales": jnp.asarray(LORA_TASK_SCALE, jnp.float32),
    }


if __name__ == "__main__":
    # Small test shapes; for real deployment keep C/H multiples of 128 so all
    # blocks stay lane-dense (M is padded to the chosen token tile automatically).
    B, N = 2, 8
    in_features, hidden_features = 32, 64
    out_features = in_features

    key = jax.random.PRNGKey(0)
    kx, kp = jax.random.split(key)
    x = jax.random.normal(kx, (B, N, in_features), jnp.float32)
    params = make_params(kp, in_features, hidden_features, out_features)

    x_out, xs_out = jax.jit(mlp_forward)(x, params)
    jax.block_until_ready((x_out, xs_out))

    # Correctness check against the direct-formulation pure-JAX reference
    # (bf16 operands / f32 accumulation mirrored; tolerances cover the
    # approximate-reciprocal GELU and the per-task LoRA decomposition).
    x_ref, xs_ref = mlp_ref(x, params)
    np.testing.assert_allclose(np.asarray(x_out, np.float32),
                               np.asarray(x_ref, np.float32),
                               rtol=2e-2, atol=5e-4)
    for i, task in enumerate(TASKS):
        np.testing.assert_allclose(np.asarray(xs_out[task], np.float32),
                                   np.asarray(xs_ref[i], np.float32),
                                   rtol=2e-2, atol=5e-4)

    print("KERNEL_OK")
</pallas_src>

<mosaic_0001>
module attributes {stable_mosaic.version = 11 : i64} {
  func.func @_mculora_mlp_kernel(%arg0: i32, %arg1: memref<16x32xbf16, #tpu.memory_space<vmem>>, %arg2: memref<32x64xbf16, #tpu.memory_space<vmem>>, %arg3: memref<1x64xf32, #tpu.memory_space<vmem>>, %arg4: memref<32x72xbf16, #tpu.memory_space<vmem>>, %arg5: memref<8x64xbf16, #tpu.memory_space<vmem>>, %arg6: memref<64x32xbf16, #tpu.memory_space<vmem>>, %arg7: memref<1x32xf32, #tpu.memory_space<vmem>>, %arg8: memref<64x8xbf16, #tpu.memory_space<vmem>>, %arg9: memref<8x32xbf16, #tpu.memory_space<vmem>>, %arg10: memref<64x64xbf16, #tpu.memory_space<vmem>>, %arg11: memref<64x64xbf16, #tpu.memory_space<vmem>>, %arg12: memref<8x8x32xbf16, #tpu.memory_space<vmem>>, %arg13: memref<16x32xf32, #tpu.memory_space<vmem>>, %arg14: memref<8x16x32xf32, #tpu.memory_space<vmem>>) attributes {dimension_semantics = [#tpu.dimension_semantics<parallel>], iteration_bounds = array<i64: 1>, scalar_prefetch = 0 : i64, scratch_operands = 0 : i64, tpu.core_type = #tpu.core_type<tc>, window_params = [{transform_indices = @transform_0, window_bounds = array<i64: 16, 32>}, {pipeline_mode = #tpu.pipeline_mode<synchronous>, transform_indices = @transform_1, window_bounds = array<i64: 32, 64>}, {pipeline_mode = #tpu.pipeline_mode<synchronous>, transform_indices = @transform_2, window_bounds = array<i64: 1, 64>}, {pipeline_mode = #tpu.pipeline_mode<synchronous>, transform_indices = @transform_3, window_bounds = array<i64: 32, 72>}, {pipeline_mode = #tpu.pipeline_mode<synchronous>, transform_indices = @transform_4, window_bounds = array<i64: 8, 64>}, {pipeline_mode = #tpu.pipeline_mode<synchronous>, transform_indices = @transform_5, window_bounds = array<i64: 64, 32>}, {pipeline_mode = #tpu.pipeline_mode<synchronous>, transform_indices = @transform_6, window_bounds = array<i64: 1, 32>}, {pipeline_mode = #tpu.pipeline_mode<synchronous>, transform_indices = @transform_7, window_bounds = array<i64: 64, 8>}, {pipeline_mode = #tpu.pipeline_mode<synchronous>, transform_indices = @transform_8, window_bounds = array<i64: 8, 32>}, {pipeline_mode = #tpu.pipeline_mode<synchronous>, transform_indices = @transform_9, window_bounds = array<i64: 64, 64>}, {pipeline_mode = #tpu.pipeline_mode<synchronous>, transform_indices = @transform_10, window_bounds = array<i64: 64, 64>}, {pipeline_mode = #tpu.pipeline_mode<synchronous>, transform_indices = @transform_11, window_bounds = array<i64: 8, 8, 32>}, {transform_indices = @transform_12, window_bounds = array<i64: 16, 32>}, {transform_indices = @transform_13, window_bounds = array<i64: 8, 16, 32>}]} {
    %c0 = arith.constant 0 : index
    %c0_0 = arith.constant 0 : index
    %0 = vector.load %arg1[%c0, %c0_0] : memref<16x32xbf16, #tpu.memory_space<vmem>>, vector<16x32xbf16>
    %c0_1 = arith.constant 0 : index
    %c0_2 = arith.constant 0 : index
    %1 = vector.load %arg2[%c0_1, %c0_2] : memref<32x64xbf16, #tpu.memory_space<vmem>>, vector<32x64xbf16>
    %cst = arith.constant dense<0.000000e+00> : vector<16x64xf32>
    %2 = tpu.matmul %0, %1, %cst {dimension_numbers = #tpu.dot_dimension_numbers<[1], [0], [0], [1], [0, 0, 1, 1], [], []>} : vector<16x32xbf16>, vector<32x64xbf16>, vector<16x64xf32> -> vector<16x64xf32>
    %c0_3 = arith.constant 0 : index
    %c0_4 = arith.constant 0 : index
    %3 = vector.load %arg3[%c0_3, %c0_4] : memref<1x64xf32, #tpu.memory_space<vmem>>, vector<1x64xf32>
    %4 = vector.broadcast %3 : vector<1x64xf32> to vector<16x64xf32>
    %5 = arith.addf %2, %4 : vector<16x64xf32>
    %c0_5 = arith.constant 0 : index
    %c0_6 = arith.constant 0 : index
    %6 = vector.load %arg4[%c0_5, %c0_6] : memref<32x72xbf16, #tpu.memory_space<vmem>>, vector<32x72xbf16>
    %cst_7 = arith.constant dense<0.000000e+00> : vector<16x72xf32>
    %7 = tpu.matmul %0, %6, %cst_7 {dimension_numbers = #tpu.dot_dimension_numbers<[1], [0], [0], [1], [0, 0, 1, 1], [], []>} : vector<16x32xbf16>, vector<32x72xbf16>, vector<16x72xf32> -> vector<16x72xf32>
    %8 = arith.truncf %7 : vector<16x72xf32> to vector<16x72xbf16>
    %9 = vector.extract_strided_slice %8 {offsets = [0, 0], sizes = [16, 8], strides = [1, 1]} : vector<16x72xbf16> to vector<16x8xbf16>
    %c0_8 = arith.constant 0 : index
    %c0_9 = arith.constant 0 : index
    %10 = vector.load %arg5[%c0_8, %c0_9] : memref<8x64xbf16, #tpu.memory_space<vmem>>, vector<8x64xbf16>
    %cst_10 = arith.constant dense<0.000000e+00> : vector<16x64xf32>
    %11 = tpu.matmul %9, %10, %cst_10 {dimension_numbers = #tpu.dot_dimension_numbers<[1], [0], [0], [1], [0, 0, 1, 1], [], []>} : vector<16x8xbf16>, vector<8x64xbf16>, vector<16x64xf32> -> vector<16x64xf32>
    %12 = arith.addf %5, %11 : vector<16x64xf32>
    %cst_11 = arith.constant 0.707106769 : f32
    %13 = vector.broadcast %cst_11 : f32 to vector<16x64xf32>
    %14 = arith.mulf %12, %13 : vector<16x64xf32>
    %cst_12 = arith.constant 0.000000e+00 : f32
    %15 = vector.broadcast %cst_12 : f32 to vector<16x64xf32>
    %16 = arith.cmpf olt, %14, %15 : vector<16x64xf32>
    %cst_13 = arith.constant 0.000000e+00 : f32
    %17 = vector.broadcast %cst_13 : f32 to vector<16x64xf32>
    %18 = arith.subf %17, %14 : vector<16x64xf32>
    %19 = arith.select %16, %18, %14 : vector<16x64xi1>, vector<16x64xf32>
    %cst_14 = arith.constant 0.327591091 : f32
    %20 = vector.broadcast %cst_14 : f32 to vector<16x64xf32>
    %21 = arith.mulf %20, %19 : vector<16x64xf32>
    %cst_15 = arith.constant 1.000000e+00 : f32
    %22 = vector.broadcast %cst_15 : f32 to vector<16x64xf32>
    %23 = arith.addf %22, %21 : vector<16x64xf32>
    %24 = tpu.reciprocal %23 {approx = true} : vector<16x64xf32> -> vector<16x64xf32>
    %cst_16 = arith.constant 1.06140542 : f32
    %25 = vector.broadcast %cst_16 : f32 to vector<16x64xf32>
    %26 = arith.mulf %24, %25 : vector<16x64xf32>
    %cst_17 = arith.constant -1.45315206 : f32
    %27 = vector.broadcast %cst_17 : f32 to vector<16x64xf32>
    %28 = arith.addf %27, %26 : vector<16x64xf32>
    %29 = arith.mulf %24, %28 : vector<16x64xf32>
    %cst_18 = arith.constant 1.42141378 : f32
    %30 = vector.broadcast %cst_18 : f32 to vector<16x64xf32>
    %31 = arith.addf %30, %29 : vector<16x64xf32>
    %32 = arith.mulf %24, %31 : vector<16x64xf32>
    %cst_19 = arith.constant -0.284496725 : f32
    %33 = vector.broadcast %cst_19 : f32 to vector<16x64xf32>
    %34 = arith.addf %33, %32 : vector<16x64xf32>
    %35 = arith.mulf %24, %34 : vector<16x64xf32>
    %cst_20 = arith.constant 0.254829586 : f32
    %36 = vector.broadcast %cst_20 : f32 to vector<16x64xf32>
    %37 = arith.addf %36, %35 : vector<16x64xf32>
    %38 = arith.mulf %24, %37 : vector<16x64xf32>
    %cst_21 = arith.constant 0.000000e+00 : f32
    %39 = vector.broadcast %cst_21 : f32 to vector<16x64xf32>
    %40 = arith.subf %39, %19 : vector<16x64xf32>
    %41 = arith.mulf %40, %19 : vector<16x64xf32>
    %42 = math.exp %41 : vector<16x64xf32>
    %43 = arith.mulf %38, %42 : vector<16x64xf32>
    %cst_22 = arith.constant 1.000000e+00 : f32
    %44 = vector.broadcast %cst_22 : f32 to vector<16x64xf32>
    %45 = arith.subf %44, %43 : vector<16x64xf32>
    %cst_23 = arith.constant 0.000000e+00 : f32
    %46 = vector.broadcast %cst_23 : f32 to vector<16x64xf32>
    %47 = arith.subf %46, %45 : vector<16x64xf32>
    %48 = arith.select %16, %47, %45 : vector<16x64xi1>, vector<16x64xf32>
    %cst_24 = arith.constant 5.000000e-01 : f32
    %49 = vector.broadcast %cst_24 : f32 to vector<16x64xf32>
    %50 = arith.mulf %49, %12 : vector<16x64xf32>
    %cst_25 = arith.constant 1.000000e+00 : f32
    %51 = vector.broadcast %cst_25 : f32 to vector<16x64xf32>
    %52 = arith.addf %51, %48 : vector<16x64xf32>
    %53 = arith.mulf %50, %52 : vector<16x64xf32>
    %54 = arith.truncf %53 : vector<16x64xf32> to vector<16x64xbf16>
    %c0_26 = arith.constant 0 : index
    %c0_27 = arith.constant 0 : index
    %55 = vector.load %arg6[%c0_26, %c0_27] : memref<64x32xbf16, #tpu.memory_space<vmem>>, vector<64x32xbf16>
    %cst_28 = arith.constant dense<0.000000e+00> : vector<16x32xf32>
    %56 = tpu.matmul %54, %55, %cst_28 {dimension_numbers = #tpu.dot_dimension_numbers<[1], [0], [0], [1], [0, 0, 1, 1], [], []>} : vector<16x64xbf16>, vector<64x32xbf16>, vector<16x32xf32> -> vector<16x32xf32>
    %c0_29 = arith.constant 0 : index
    %c0_30 = arith.constant 0 : index
    %57 = vector.load %arg7[%c0_29, %c0_30] : memref<1x32xf32, #tpu.memory_space<vmem>>, vector<1x32xf32>
    %58 = vector.broadcast %57 : vector<1x32xf32> to vector<16x32xf32>
    %59 = arith.addf %56, %58 : vector<16x32xf32>
    %c0_31 = arith.constant 0 : index
    %c0_32 = arith.constant 0 : index
    %60 = vector.load %arg8[%c0_31, %c0_32] : memref<64x8xbf16, #tpu.memory_space<vmem>>, vector<64x8xbf16>
    %cst_33 = arith.constant dense<0.000000e+00> : vector<16x8xf32>
    %61 = tpu.matmul %54, %60, %cst_33 {dimension_numbers = #tpu.dot_dimension_numbers<[1], [0], [0], [1], [0, 0, 1, 1], [], []>} : vector<16x64xbf16>, vector<64x8xbf16>, vector<16x8xf32> -> vector<16x8xf32>
    %62 = arith.truncf %61 : vector<16x8xf32> to vector<16x8xbf16>
    %c0_34 = arith.constant 0 : index
    %c0_35 = arith.constant 0 : index
    %63 = vector.load %arg9[%c0_34, %c0_35] : memref<8x32xbf16, #tpu.memory_space<vmem>>, vector<8x32xbf16>
    %cst_36 = arith.constant dense<0.000000e+00> : vector<16x32xf32>
    %64 = tpu.matmul %62, %63, %cst_36 {dimension_numbers = #tpu.dot_dimension_numbers<[1], [0], [0], [1], [0, 0, 1, 1], [], []>} : vector<16x8xbf16>, vector<8x32xbf16>, vector<16x32xf32> -> vector<16x32xf32>
    %65 = arith.addf %59, %64 : vector<16x32xf32>
    %c0_37 = arith.constant 0 : index
    %c0_38 = arith.constant 0 : index
    %66 = vector.load %arg13[%c0_37, %c0_38] : memref<16x32xf32, #tpu.memory_space<vmem>>, vector<16x32xf32>
    tpu.vector_store %arg13[%c0_37, %c0_38], %65 {strides = array<i32>} : memref<16x32xf32, #tpu.memory_space<vmem>>, vector<16x32xf32>,
    %67 = arith.truncf %5 : vector<16x64xf32> to vector<16x64xbf16>
    %c0_39 = arith.constant 0 : index
    %c0_40 = arith.constant 0 : index
    %68 = vector.load %arg10[%c0_39, %c0_40] : memref<64x64xbf16, #tpu.memory_space<vmem>>, vector<64x64xbf16>
    %cst_41 = arith.constant dense<0.000000e+00> : vector<16x64xf32>
    %69 = tpu.matmul %67, %68, %cst_41 {dimension_numbers = #tpu.dot_dimension_numbers<[1], [0], [0], [1], [0, 0, 1, 1], [], []>} : vector<16x64xbf16>, vector<64x64xbf16>, vector<16x64xf32> -> vector<16x64xf32>
    %70 = vector.extract_strided_slice %8 {offsets = [0, 8], sizes = [16, 64], strides = [1, 1]} : vector<16x72xbf16> to vector<16x64xbf16>
    %c0_42 = arith.constant 0 : index
    %c0_43 = arith.constant 0 : index
    %71 = vector.load %arg11[%c0_42, %c0_43] : memref<64x64xbf16, #tpu.memory_space<vmem>>, vector<64x64xbf16>
    %cst_44 = arith.constant dense<0.000000e+00> : vector<16x64xf32>
    %72 = tpu.matmul %70, %71, %cst_44 {dimension_numbers = #tpu.dot_dimension_numbers<[1], [0], [0], [1], [0, 0, 1, 1], [], []>} : vector<16x64xbf16>, vector<64x64xbf16>, vector<16x64xf32> -> vector<16x64xf32>
    %73 = arith.addf %69, %72 : vector<16x64xf32>
    %74 = arith.truncf %73 : vector<16x64xf32> to vector<16x64xbf16>
    %75 = vector.extract_strided_slice %74 {offsets = [0, 0], sizes = [16, 8], strides = [1, 1]} : vector<16x64xbf16> to vector<16x8xbf16>
    %c0_45 = arith.constant 0 : index
    %c0_46 = arith.constant 0 : index
    %c0_47 = arith.constant 0 : index
    %76 = vector.load %arg12[%c0_45, %c0_46, %c0_47] : memref<8x8x32xbf16, #tpu.memory_space<vmem>>, vector<1x8x32xbf16>
    %77 = vector.shape_cast %76 : vector<1x8x32xbf16> to vector<8x32xbf16>
    %cst_48 = arith.constant dense<0.000000e+00> : vector<16x32xf32>
    %78 = tpu.matmul %75, %77, %cst_48 {dimension_numbers = #tpu.dot_dimension_numbers<[1], [0], [0], [1], [0, 0, 1, 1], [], []>} : vector<16x8xbf16>, vector<8x32xbf16>, vector<16x32xf32> -> vector<16x32xf32>
    %79 = arith.addf %59, %78 : vector<16x32xf32>
    %c0_49 = arith.constant 0 : index
    %c0_50 = arith.constant 0 : index
    %c0_51 = arith.constant 0 : index
    %80 = vector.load %arg14[%c0_49, %c0_50, %c0_51] : memref<8x16x32xf32, #tpu.memory_space<vmem>>, vector<1x16x32xf32>
    %81 = vector.shape_cast %80 : vector<1x16x32xf32> to vector<16x32xf32>
    %82 = vector.shape_cast %79 : vector<16x32xf32> to vector<1x16x32xf32>
    tpu.vector_store %arg14[%c0_49, %c0_50, %c0_51], %82 {strides = array<i32>} : memref<8x16x32xf32, #tpu.memory_space<vmem>>, vector<1x16x32xf32>,
    %83 = vector.extract_strided_slice %74 {offsets = [0, 8], sizes = [16, 8], strides = [1, 1]} : vector<16x64xbf16> to vector<16x8xbf16>
    %c1 = arith.constant 1 : index
    %c0_52 = arith.constant 0 : index
    %c0_53 = arith.constant 0 : index
    %84 = vector.load %arg12[%c1, %c0_52, %c0_53] : memref<8x8x32xbf16, #tpu.memory_space<vmem>>, vector<1x8x32xbf16>
    %85 = vector.shape_cast %84 : vector<1x8x32xbf16> to vector<8x32xbf16>
    %cst_54 = arith.constant dense<0.000000e+00> : vector<16x32xf32>
    %86 = tpu.matmul %83, %85, %cst_54 {dimension_numbers = #tpu.dot_dimension_numbers<[1], [0], [0], [1], [0, 0, 1, 1], [], []>} : vector<16x8xbf16>, vector<8x32xbf16>, vector<16x32xf32> -> vector<16x32xf32>
    %87 = arith.addf %59, %86 : vector<16x32xf32>
    %c1_55 = arith.constant 1 : index
    %c0_56 = arith.constant 0 : index
    %c0_57 = arith.constant 0 : index
    %88 = vector.load %arg14[%c1_55, %c0_56, %c0_57] : memref<8x16x32xf32, #tpu.memory_space<vmem>>, vector<1x16x32xf32>
    %89 = vector.shape_cast %88 : vector<1x16x32xf32> to vector<16x32xf32>
    %90 = vector.shape_cast %87 : vector<16x32xf32> to vector<1x16x32xf32>
    tpu.vector_store %arg14[%c1_55, %c0_56, %c0_57], %90 {strides = array<i32>} : memref<8x16x32xf32, #tpu.memory_space<vmem>>, vector<1x16x32xf32>,
    %91 = vector.extract_strided_slice %74 {offsets = [0, 16], sizes = [16, 8], strides = [1, 1]} : vector<16x64xbf16> to vector<16x8xbf16>
    %c2 = arith.constant 2 : index
    %c0_58 = arith.constant 0 : index
    %c0_59 = arith.constant 0 : index
    %92 = vector.load %arg12[%c2, %c0_58, %c0_59] : memref<8x8x32xbf16, #tpu.memory_space<vmem>>, vector<1x8x32xbf16>
    %93 = vector.shape_cast %92 : vector<1x8x32xbf16> to vector<8x32xbf16>
    %cst_60 = arith.constant dense<0.000000e+00> : vector<16x32xf32>
    %94 = tpu.matmul %91, %93, %cst_60 {dimension_numbers = #tpu.dot_dimension_numbers<[1], [0], [0], [1], [0, 0, 1, 1], [], []>} : vector<16x8xbf16>, vector<8x32xbf16>, vector<16x32xf32> -> vector<16x32xf32>
    %95 = arith.addf %59, %94 : vector<16x32xf32>
    %c2_61 = arith.constant 2 : index
    %c0_62 = arith.constant 0 : index
    %c0_63 = arith.constant 0 : index
    %96 = vector.load %arg14[%c2_61, %c0_62, %c0_63] : memref<8x16x32xf32, #tpu.memory_space<vmem>>, vector<1x16x32xf32>
    %97 = vector.shape_cast %96 : vector<1x16x32xf32> to vector<16x32xf32>
    %98 = vector.shape_cast %95 : vector<16x32xf32> to vector<1x16x32xf32>
    tpu.vector_store %arg14[%c2_61, %c0_62, %c0_63], %98 {strides = array<i32>} : memref<8x16x32xf32, #tpu.memory_space<vmem>>, vector<1x16x32xf32>,
    %99 = vector.extract_strided_slice %74 {offsets = [0, 24], sizes = [16, 8], strides = [1, 1]} : vector<16x64xbf16> to vector<16x8xbf16>
    %c3 = arith.constant 3 : index
    %c0_64 = arith.constant 0 : index
    %c0_65 = arith.constant 0 : index
    %100 = vector.load %arg12[%c3, %c0_64, %c0_65] : memref<8x8x32xbf16, #tpu.memory_space<vmem>>, vector<1x8x32xbf16>
    %101 = vector.shape_cast %100 : vector<1x8x32xbf16> to vector<8x32xbf16>
    %cst_66 = arith.constant dense<0.000000e+00> : vector<16x32xf32>
    %102 = tpu.matmul %99, %101, %cst_66 {dimension_numbers = #tpu.dot_dimension_numbers<[1], [0], [0], [1], [0, 0, 1, 1], [], []>} : vector<16x8xbf16>, vector<8x32xbf16>, vector<16x32xf32> -> vector<16x32xf32>
    %103 = arith.addf %59, %102 : vector<16x32xf32>
    %c3_67 = arith.constant 3 : index
    %c0_68 = arith.constant 0 : index
    %c0_69 = arith.constant 0 : index
    %104 = vector.load %arg14[%c3_67, %c0_68, %c0_69] : memref<8x16x32xf32, #tpu.memory_space<vmem>>, vector<1x16x32xf32>
    %105 = vector.shape_cast %104 : vector<1x16x32xf32> to vector<16x32xf32>
    %106 = vector.shape_cast %103 : vector<16x32xf32> to vector<1x16x32xf32>
    tpu.vector_store %arg14[%c3_67, %c0_68, %c0_69], %106 {strides = array<i32>} : memref<8x16x32xf32, #tpu.memory_space<vmem>>, vector<1x16x32xf32>,
    %107 = vector.extract_strided_slice %74 {offsets = [0, 32], sizes = [16, 8], strides = [1, 1]} : vector<16x64xbf16> to vector<16x8xbf16>
    %c4 = arith.constant 4 : index
    %c0_70 = arith.constant 0 : index
    %c0_71 = arith.constant 0 : index
    %108 = vector.load %arg12[%c4, %c0_70, %c0_71] : memref<8x8x32xbf16, #tpu.memory_space<vmem>>, vector<1x8x32xbf16>
    %109 = vector.shape_cast %108 : vector<1x8x32xbf16> to vector<8x32xbf16>
    %cst_72 = arith.constant dense<0.000000e+00> : vector<16x32xf32>
    %110 = tpu.matmul %107, %109, %cst_72 {dimension_numbers = #tpu.dot_dimension_numbers<[1], [0], [0], [1], [0, 0, 1, 1], [], []>} : vector<16x8xbf16>, vector<8x32xbf16>, vector<16x32xf32> -> vector<16x32xf32>
    %111 = arith.addf %59, %110 : vector<16x32xf32>
    %c4_73 = arith.constant 4 : index
    %c0_74 = arith.constant 0 : index
    %c0_75 = arith.constant 0 : index
    %112 = vector.load %arg14[%c4_73, %c0_74, %c0_75] : memref<8x16x32xf32, #tpu.memory_space<vmem>>, vector<1x16x32xf32>
    %113 = vector.shape_cast %112 : vector<1x16x32xf32> to vector<16x32xf32>
    %114 = vector.shape_cast %111 : vector<16x32xf32> to vector<1x16x32xf32>
    tpu.vector_store %arg14[%c4_73, %c0_74, %c0_75], %114 {strides = array<i32>} : memref<8x16x32xf32, #tpu.memory_space<vmem>>, vector<1x16x32xf32>,
    %115 = vector.extract_strided_slice %74 {offsets = [0, 40], sizes = [16, 8], strides = [1, 1]} : vector<16x64xbf16> to vector<16x8xbf16>
    %c5 = arith.constant 5 : index
    %c0_76 = arith.constant 0 : index
    %c0_77 = arith.constant 0 : index
    %116 = vector.load %arg12[%c5, %c0_76, %c0_77] : memref<8x8x32xbf16, #tpu.memory_space<vmem>>, vector<1x8x32xbf16>
    %117 = vector.shape_cast %116 : vector<1x8x32xbf16> to vector<8x32xbf16>
    %cst_78 = arith.constant dense<0.000000e+00> : vector<16x32xf32>
    %118 = tpu.matmul %115, %117, %cst_78 {dimension_numbers = #tpu.dot_dimension_numbers<[1], [0], [0], [1], [0, 0, 1, 1], [], []>} : vector<16x8xbf16>, vector<8x32xbf16>, vector<16x32xf32> -> vector<16x32xf32>
    %119 = arith.addf %59, %118 : vector<16x32xf32>
    %c5_79 = arith.constant 5 : index
    %c0_80 = arith.constant 0 : index
    %c0_81 = arith.constant 0 : index
    %120 = vector.load %arg14[%c5_79, %c0_80, %c0_81] : memref<8x16x32xf32, #tpu.memory_space<vmem>>, vector<1x16x32xf32>
    %121 = vector.shape_cast %120 : vector<1x16x32xf32> to vector<16x32xf32>
    %122 = vector.shape_cast %119 : vector<16x32xf32> to vector<1x16x32xf32>
    tpu.vector_store %arg14[%c5_79, %c0_80, %c0_81], %122 {strides = array<i32>} : memref<8x16x32xf32, #tpu.memory_space<vmem>>, vector<1x16x32xf32>,
    %123 = vector.extract_strided_slice %74 {offsets = [0, 48], sizes = [16, 8], strides = [1, 1]} : vector<16x64xbf16> to vector<16x8xbf16>
    %c6 = arith.constant 6 : index
    %c0_82 = arith.constant 0 : index
    %c0_83 = arith.constant 0 : index
    %124 = vector.load %arg12[%c6, %c0_82, %c0_83] : memref<8x8x32xbf16, #tpu.memory_space<vmem>>, vector<1x8x32xbf16>
    %125 = vector.shape_cast %124 : vector<1x8x32xbf16> to vector<8x32xbf16>
    %cst_84 = arith.constant dense<0.000000e+00> : vector<16x32xf32>
    %126 = tpu.matmul %123, %125, %cst_84 {dimension_numbers = #tpu.dot_dimension_numbers<[1], [0], [0], [1], [0, 0, 1, 1], [], []>} : vector<16x8xbf16>, vector<8x32xbf16>, vector<16x32xf32> -> vector<16x32xf32>
    %127 = arith.addf %59, %126 : vector<16x32xf32>
    %c6_85 = arith.constant 6 : index
    %c0_86 = arith.constant 0 : index
    %c0_87 = arith.constant 0 : index
    %128 = vector.load %arg14[%c6_85, %c0_86, %c0_87] : memref<8x16x32xf32, #tpu.memory_space<vmem>>, vector<1x16x32xf32>
    %129 = vector.shape_cast %128 : vector<1x16x32xf32> to vector<16x32xf32>
    %130 = vector.shape_cast %127 : vector<16x32xf32> to vector<1x16x32xf32>
    tpu.vector_store %arg14[%c6_85, %c0_86, %c0_87], %130 {strides = array<i32>} : memref<8x16x32xf32, #tpu.memory_space<vmem>>, vector<1x16x32xf32>,
    %131 = vector.extract_strided_slice %74 {offsets = [0, 56], sizes = [16, 8], strides = [1, 1]} : vector<16x64xbf16> to vector<16x8xbf16>
    %c7 = arith.constant 7 : index
    %c0_88 = arith.constant 0 : index
    %c0_89 = arith.constant 0 : index
    %132 = vector.load %arg12[%c7, %c0_88, %c0_89] : memref<8x8x32xbf16, #tpu.memory_space<vmem>>, vector<1x8x32xbf16>
    %133 = vector.shape_cast %132 : vector<1x8x32xbf16> to vector<8x32xbf16>
    %cst_90 = arith.constant dense<0.000000e+00> : vector<16x32xf32>
    %134 = tpu.matmul %131, %133, %cst_90 {dimension_numbers = #tpu.dot_dimension_numbers<[1], [0], [0], [1], [0, 0, 1, 1], [], []>} : vector<16x8xbf16>, vector<8x32xbf16>, vector<16x32xf32> -> vector<16x32xf32>
    %135 = arith.addf %59, %134 : vector<16x32xf32>
    %c7_91 = arith.constant 7 : index
    %c0_92 = arith.constant 0 : index
    %c0_93 = arith.constant 0 : index
    %136 = vector.load %arg14[%c7_91, %c0_92, %c0_93] : memref<8x16x32xf32, #tpu.memory_space<vmem>>, vector<1x16x32xf32>
    %137 = vector.shape_cast %136 : vector<1x16x32xf32> to vector<16x32xf32>
    %138 = vector.shape_cast %135 : vector<16x32xf32> to vector<1x16x32xf32>
    tpu.vector_store %arg14[%c7_91, %c0_92, %c0_93], %138 {strides = array<i32>} : memref<8x16x32xf32, #tpu.memory_space<vmem>>, vector<1x16x32xf32>,
    return
  }
  func.func @transform_0(%arg0: i32) -> (i32, i32) {
    %c0_i32 = arith.constant 0 : i32
    %c0_i32_0 = arith.constant 0 : i32
    return %arg0, %c0_i32 : i32, i32
  }
  func.func @transform_1(%arg0: i32) -> (i32, i32) {
    %c0_i32 = arith.constant 0 : i32
    %c0_i32_0 = arith.constant 0 : i32
    %c0_i32_1 = arith.constant 0 : i32
    return %c0_i32, %c0_i32_0 : i32, i32
  }
  func.func @transform_2(%arg0: i32) -> (i32, i32) {
    %c0_i32 = arith.constant 0 : i32
    %c0_i32_0 = arith.constant 0 : i32
    %c0_i32_1 = arith.constant 0 : i32
    return %c0_i32, %c0_i32_0 : i32, i32
  }
  func.func @transform_3(%arg0: i32) -> (i32, i32) {
    %c0_i32 = arith.constant 0 : i32
    %c0_i32_0 = arith.constant 0 : i32
    %c0_i32_1 = arith.constant 0 : i32
    return %c0_i32, %c0_i32_0 : i32, i32
  }
  func.func @transform_4(%arg0: i32) -> (i32, i32) {
    %c0_i32 = arith.constant 0 : i32
    %c0_i32_0 = arith.constant 0 : i32
    %c0_i32_1 = arith.constant 0 : i32
    return %c0_i32, %c0_i32_0 : i32, i32
  }
  func.func @transform_5(%arg0: i32) -> (i32, i32) {
    %c0_i32 = arith.constant 0 : i32
    %c0_i32_0 = arith.constant 0 : i32
    %c0_i32_1 = arith.constant 0 : i32
    return %c0_i32, %c0_i32_0 : i32, i32
  }
  func.func @transform_6(%arg0: i32) -> (i32, i32) {
    %c0_i32 = arith.constant 0 : i32
    %c0_i32_0 = arith.constant 0 : i32
    %c0_i32_1 = arith.constant 0 : i32
    return %c0_i32, %c0_i32_0 : i32, i32
  }
  func.func @transform_7(%arg0: i32) -> (i32, i32) {
    %c0_i32 = arith.constant 0 : i32
    %c0_i32_0 = arith.constant 0 : i32
    %c0_i32_1 = arith.constant 0 : i32
    return %c0_i32, %c0_i32_0 : i32, i32
  }
  func.func @transform_8(%arg0: i32) -> (i32, i32) {
    %c0_i32 = arith.constant 0 : i32
    %c0_i32_0 = arith.constant 0 : i32
    %c0_i32_1 = arith.constant 0 : i32
    return %c0_i32, %c0_i32_0 : i32, i32
  }
  func.func @transform_9(%arg0: i32) -> (i32, i32) {
    %c0_i32 = arith.constant 0 : i32
    %c0_i32_0 = arith.constant 0 : i32
    %c0_i32_1 = arith.constant 0 : i32
    return %c0_i32, %c0_i32_0 : i32, i32
  }
  func.func @transform_10(%arg0: i32) -> (i32, i32) {
    %c0_i32 = arith.constant 0 : i32
    %c0_i32_0 = arith.constant 0 : i32
    %c0_i32_1 = arith.constant 0 : i32
    return %c0_i32, %c0_i32_0 : i32, i32
  }
  func.func @transform_11(%arg0: i32) -> (i32, i32, i32) {
    %c0_i32 = arith.constant 0 : i32
    %c0_i32_0 = arith.constant 0 : i32
    %c0_i32_1 = arith.constant 0 : i32
    %c0_i32_2 = arith.constant 0 : i32
    return %c0_i32, %c0_i32_0, %c0_i32_1 : i32, i32, i32
  }
  func.func @transform_12(%arg0: i32) -> (i32, i32) {
    %c0_i32 = arith.constant 0 : i32
    %c0_i32_0 = arith.constant 0 : i32
    return %arg0, %c0_i32 : i32, i32
  }
  func.func @transform_13(%arg0: i32) -> (i32, i32, i32) {
    %c0_i32 = arith.constant 0 : i32
    %c0_i32_0 = arith.constant 0 : i32
    %c0_i32_1 = arith.constant 0 : i32
    return %c0_i32, %arg0, %c0_i32_0 : i32, i32, i32
  }
}

</mosaic_0001>

<bundles_post_ra>
// kernel: mlp_forward.1
= control target key start
LH: loop header
LB: loop body
LE: loop exit
PB: predicated region body
PF: predicated region fallthrough
CT: control target
= control target key end

     0   :  { %v1416_v1 = vmov 0.0   ;;  %vm1417_vm0 = vmmov 0   ;;  %vm183_vm1 = vcmask 1043456   ;;  %vm75_vm2 = vcmask 261120   ;;  %s1805_s0 = inlined_call_operand.vmem [shape: bf16[16,32], index: 0, kind: input, shape index: {}]   ;;  %s1806_s1 = inlined_call_operand.vmem [shape: bf16[32,64], index: 1, kind: input, shape index: {}]   ;;  %s1807_s2 = inlined_call_operand.vmem [shape: f32[1,64], index: 2, kind: input, shape index: {}]   ;;  %s1808_s3 = inlined_call_operand.vmem [shape: bf16[32,72], index: 3, kind: input, shape index: {}]   ;;  %s1809_s4 = inlined_call_operand.vmem [shape: bf16[8,64], index: 4, kind: input, shape index: {}]   ;;  %s1810_s5 = inlined_call_operand.vmem [shape: bf16[64,32], index: 5, kind: input, shape index: {}]   ;;  %s1811_s6 = inlined_call_operand.vmem [shape: f32[1,32], index: 6, kind: input, shape index: {}]   ;;  %s1812_s7 = inlined_call_operand.vmem [shape: bf16[64,8], index: 7, kind: input, shape index: {}]   ;;  %s1813_s8 = inlined_call_operand.vmem [shape: bf16[8,32], index: 8, kind: input, shape index: {}]   ;;  %s1814_s9 = inlined_call_operand.vmem [shape: bf16[64,64], index: 9, kind: input, shape index: {}]   ;;  %s1815_s10 = inlined_call_operand.vmem [shape: bf16[64,64], index: 10, kind: input, shape index: {}]   ;;  %s1816_s11 = inlined_call_operand.vmem [shape: bf16[8,8,32], index: 11, kind: input, shape index: {}]   ;;  %s1817_s12 = inlined_call_operand.hbm [shape: f32[16,32], index: 12, kind: output, shape index: {0}]   ;;  %s1818_s13 = inlined_call_operand.vmem [shape: f32[8,16,32], index: 13, kind: output, shape index: {1}]  }
   0x1   :  { %v1363_v0 = vld [vmem:[%s1808_s3] sm:$0xff]   ;;  %1231 = vmatprep.subr.bf16.mxu1 %v1416_v1  ;;  %1223 = vmatprep.subr.bf16.mxu0 %v1416_v1  ;;  %v1364_v2 = vld [vmem:[%s1808_s3 + $0x8] sm:$0xff]  }
   0x2   :  { %1232 = vmatpush3.bf16.msra.mxu1 %v1363_v0  ;;  %1235 = vmatprep.mubr.msk.bf16.mxu1 %vm1417_vm0, %v1416_v1  ;;  %v1365_v3 = vld [vmem:[%s1805_s0] sm:$0xff]   ;;  %v1367_v5 = vld [vmem:[%s1806_s1 + $0x8] sm:$0xff]  }
   0x3   :  { %1233 = vmatprep.subr.bf16.mxu1 %v1416_v1  ;;  %v1366_v4 = vld [vmem:[%s1806_s1] sm:$0xff]   ;;  %1227 = vmatprep.mubr.msk.bf16.mxu0 %vm1417_vm0, %v1416_v1 }
   0x4   :  { %1224 = vmatpush3.bf16.msra.mxu0 %v1366_v4  ;;  %v178_v6 = vld [vmem:[%s1809_s4] sm:$0xf] }
   0x5   :  { %1225 = vmatprep.subr.bf16.mxu0 %v1416_v1  ;;  %v185_v7 = vsel %vm183_vm1, %v178_v6, 0 }
   0x6   :  { %1234 = vmatpush3.bf16.msra.mxu1 %v1364_v2 }
   0x7   :  { %1245 = vmatprep.subr.bf16.mxu1 %v1416_v1 }
   0x8   :  { %1226 = vmatpush3.bf16.msra.mxu0 %v1367_v5 }
   0x9   :  { %1236 = vmatmul.mubr.msk.bf16.vlgmr.msra.gmra.mrb[0].mxu1 %vm75_vm2, %v1365_v3  ;;  %1239 = vmatprep.subr.bf16.mxu0 %v1416_v1 }
   0xa   :  { %1253 = vmatprep.mubr.msk.bf16.mxu1 %vm1417_vm0, %v1416_v1 }
   0xb   :  { %1228 = vmatmul.mubr.msk.bf16.vlgmr.msra.gmra.mrb[0].mxu0 %vm75_vm2, %v1365_v3 }
   0xc   :  { %1240 = vmatpush3.bf16.msra.mxu0 %v185_v7  ;;  %1241 = vmatprep.mubr.msk.bf16.mxu0 %vm1417_vm0, %v1416_v1 }
   0xd   :  { %1257 = vmatprep.subr.bf16.mxu0 %v1416_v1 }
   0xe   :  { %19 = vsyncpa [#allocation3], 0  ;;  %vm179_vm3 = vcmask 64512   ;;  %s1418_s0 = smov 120   ;;  %v1368_v17 = vld [vmem:[%s1812_s7] sm:$0xff]   ;;  %v1370_v19 = vld [vmem:[%s1812_s7 + $0x8] sm:$0xff]  }
   0xf   :  { %v1369_v18 = vld [vmem:[%s1810_s5] sm:$0xff]   ;;  %v1371_v20 = vld [vmem:[%s1810_s5 + $0x8] sm:$0xff]   ;;  %v1372_v21 = vld [vmem:[%s1812_s7 + $0x10] sm:$0xff]   ;;  %vm324_vm6 = vcmask 523264   ;;  %s1419_s16 = smov 112   ;;  %s1420_s3 = smov 104  }
  0x10   :  { %1246 = vmatpush3.bf16.msra.mxu1 %v1369_v18  ;;  %v1373_v22 = vld [vmem:[%s1810_s5 + $0x10] sm:$0xff]   ;;  %v1374_v23 = vld [vmem:[%s1812_s7 + $0x18] sm:$0xff]   ;;  %v1117_v25 = vld [vmem:[%s1807_s2] ss:$0 sm:$0xff]  ;;  %s1421_s2 = smov 96   ;;  %s1423_s7 = smov 80  }
  0x11   :  { %1247 = vmatprep.subr.bf16.mxu1 %v1416_v1  ;;  %v1375_v24 = vld [vmem:[%s1810_s5 + $0x18] sm:$0xff]   ;;  %s1422_s5 = smov 88   ;;  %s1424_s17 = smov 72  }
  0x12   :  { %s1425_s28 = smov [#allocation2]  }
  0x14   :  { %1248 = vmatpush3.bf16.msra.mxu1 %v1371_v20 }
  0x15   :  { %1249 = vmatprep.subr.bf16.mxu1 %v1416_v1 }
  0x18   :  { %1250 = vmatpush3.bf16.msra.mxu1 %v1373_v22 }
  0x19   :  { %1251 = vmatprep.subr.bf16.mxu1 %v1416_v1 }
  0x1c   :  { %1252 = vmatpush3.bf16.msra.mxu1 %v1375_v24 }
  0x1d   :  { %1269 = vmatprep.subr.bf16.mxu1 %v1416_v1 }
  0xdc   :  { %v170_v8 = vpop.f32.mrb[0].mxu1 }
  0xdd   :  { %v1237_v9 = vpop.f32.mrb[1].mxu1 }
  0xde   :  { %v173_v10 = vpop.f32.mrb[2].mxu1  ;;  %v113_v13 = vpop.f32.mrb[0].mxu0 }
  0xdf   :  { %v177_v11 = vpack.c.bf16 %v173_v10, %v170_v8  ;;  %v1238_v12 = vpop.f32.mrb[3].mxu1  ;;  %v1229_v14 = vpop.f32.mrb[1].mxu0  ;;  %v1573_v26 = vadd.f32 %v1117_v25, %v113_v13 }
  0xe0   :  { %v116_v15 = vpop.f32.mrb[2].mxu0 }
  0xe1   :  { %513 = vrot.lane.b32.xlu0 %v177_v11, %s1418_s0  ;;  %1242 = vmatmul.mubr.msk.bf16.vlgmr.msra.gmra.mrb[4].mxu0 %vm179_vm3, %v177_v11  ;;  %v1230_v16 = vpop.f32.mrb[3].mxu0  ;;  %v1575_v28 = vadd.f32 %v1117_v25, %v116_v15  ;;  %v1377_v25 = vld [vmem:[%s1815_s10 + $0x8] sm:$0xff]  }
  0xe2   :  { %1265 = vmatprep.mubr.msk.bf16.mxu0 %vm1417_vm0, %v1416_v1  ;;  %1258 = vmatpush3.bf16.msra.mxu0 %v1368_v17 }
  0xe3   :  { %1259 = vmatprep.subr.bf16.mxu0 %v1416_v1 }
  0xe6   :  { %1260 = vmatpush3.bf16.msra.mxu0 %v1370_v19 }
  0xe7   :  { %1261 = vmatprep.subr.bf16.mxu0 %v1416_v1 }
  0xea   :  { %1262 = vmatpush3.bf16.msra.mxu0 %v1372_v21 }
  0xeb   :  { %1263 = vmatprep.subr.bf16.mxu0 %v1416_v1 }
  0xee   :  { %1264 = vmatpush3.bf16.msra.mxu0 %v1374_v23  ;;  %v1376_v23 = vld [vmem:[%s1815_s10] sm:$0xff]  }
  0xef   :  { %1275 = vmatprep.subr.bf16.mxu0 %v1416_v1 }
 0x1b4   :  { %v221_v27 = vpop.f32.mrb[4].mxu0 }
 0x1b5   :  { %v228_v29 = vadd.f32 %v221_v27, %v1573_v26  ;;  %v1243_v30 = vpop.f32.mrb[5].mxu0  ;;  %v1378_v27 = vld [vmem:[%s1815_s10 + $0x10] sm:$0xff]  }
 0x1b6   :  { %v224_v31 = vpop.f32.mrb[6].mxu0  ;;  %v1380_v30 = vld [vmem:[%s1814_s9] sm:$0xff]  }
 0x1b7   :  { %v230_v32 = vmul.f32 0.70710677, %v228_v29  ;;  %v229_v33 = vadd.f32 %v224_v31, %v1575_v28  ;;  %v1244_v34 = vpop.f32.mrb[7].mxu0  ;;  %v278_v18 = vmul.f32 0.5, %v228_v29  ;;  %v1379_v29 = vld [vmem:[%s1815_s10 + $0x18] sm:$0xff]   ;;  %v514_v31 = vpop.permute.xlu0 %513 }
 0x1b8   :  { %v1383_v34 = vld [vmem:[%s1814_s9 + $0x18] sm:$0xff]  }
 0x1b9   :  { %vm232_vm4 = vcmp.lt.f32.partialorder %v230_v32, 0.0  ;;  %v234_v35 = vsub.f32 0.0, %v230_v32  ;;  %v231_v36 = vmul.f32 0.70710677, %v229_v33  ;;  %v279_v19 = vmul.f32 0.5, %v229_v33  ;;  %v1382_v33 = vld [vmem:[%s1814_s9 + $0x10] sm:$0xff]  }
 0x1bb   :  { %v236_v37 = vsel %vm232_vm4, %v234_v35, %v230_v32  ;;  %vm233_vm5 = vcmp.lt.f32.partialorder %v231_v36, 0.0  ;;  %v235_v38 = vsub.f32 0.0, %v231_v36  ;;  %v1381_v32 = vld [vmem:[%s1814_s9 + $0x8] sm:$0xff]   ;;  %v495_v35 = vpack.c.bf16 %v1575_v28, %v1573_v26  ;;  %v652_v26 = vld [vmem:[%s1816_s11] sm:$0xf]  ;;  %s1102_s9 = sshll.u32 %s1425_s28, 4  ;;  %s1103_s9 = int_to_ptr.vmem [resolvable:$true] %s1102_s9 }
 0x1bc   :  { %v238_v39 = vmul.f32 0.3275911, %v236_v37  ;;  %v262_v44 = vsub.f32 0.0, %v236_v37  ;;  %s1392_s29 = scalar_lea.vmem %s1103_s9, 256  ;;  %p1397_p1 = scmp.lt.s32.totalorder %s1103_s9, %s1103_s9 }
 0x1bd   :  { %v237_v40 = vsel %vm233_vm5, %v235_v38, %v231_v36  ;;  %v443_v36 = vld [vmem:[%s1813_s8] sm:$0xf]  ;;  %p1393_p0 = scmp.ne.s32.totalorder %s1103_s9, %s1392_s29  ;;  %p1398_p2 = scmp.lt.s32.totalorder %s1392_s29, %s1392_s29 }
 0x1be   :  { %v240_v41 = vadd.f32 1.0, %v238_v39  ;;  %v239_v42 = vmul.f32 0.3275911, %v237_v40  ;;  %v263_v45 = vsub.f32 0.0, %v237_v40  ;;  %v264_v47 = vmul.f32 %v262_v44, %v236_v37 }
 0x1bf   :  { %v448_v37 = vsel %vm183_vm1, %v443_v36, 0  ;;  %p1399_p3 = por %p1398_p2, %p1397_p1 }
 0x1c0   :  { %1384 = vrcp.f32 %v240_v41  ;;  %v241_v43 = vadd.f32 1.0, %v239_v42  ;;  %v265_v51 = vmul.f32 %v263_v45, %v237_v40  ;;  %v266_v52 = vmul.f32 1.442695, %v264_v47  ;;  %v1161_v47 = vld [vmem:[%s1816_s11 + $0x10] sm:$0xf] }
 0x1c1   :  { %p1400_p4 = pnand %p1399_p3, %p1393_p0 }
 0x1c2   :  { %1386 = vrcp.f32 %v241_v43  ;;  %v268_v57 = vmul.f32 1.442695, %v265_v51  ;;  %v1149_v51 = vld [vmem:[%s1816_s11 + $0x4] sm:$0xf] }
 0x1c3   :  { %1388 = vpow2.f32 %v266_v52 }
 0x1c4   :  { %1390 = vpow2.f32 %v268_v57 }
 0x1ca   :  { %v1385_v46 = vpop.eup %1384 }
 0x1cb   :  { %v244_v48 = vmul.f32 1.0614054, %v1385_v46 }
 0x1cc   :  { %v1387_v49 = vpop.eup %1386 }
 0x1cd   :  { %v246_v50 = vadd.f32 -1.4531521, %v244_v48  ;;  %v245_v53 = vmul.f32 1.0614054, %v1387_v49  ;;  %v1389_v5 = vpop.eup %1388  ;;  %v881_v48 = vsel %vm183_vm1, %v1161_v47, 0 }
 0x1ce   :  { %v1391_v9 = vpop.eup %1390 }
 0x1cf   :  { %v248_v54 = vmul.f32 %v1385_v46, %v246_v50  ;;  %v247_v55 = vadd.f32 -1.4531521, %v245_v53 }
 0x1d1   :  { %v250_v56 = vadd.f32 1.4214138, %v248_v54  ;;  %v249_v58 = vmul.f32 %v1387_v49, %v247_v55  ;;  %v713_v55 = vsel %vm183_vm1, %v1149_v51, 0 }
 0x1d3   :  { %v252_v59 = vmul.f32 %v1385_v46, %v250_v56  ;;  %v251_v60 = vadd.f32 1.4214138, %v249_v58  ;;  %v1153_v56 = vld [vmem:[%s1816_s11 + $0x8] sm:$0xf] }
 0x1d4   :  { %v769_v57 = vsel %vm183_vm1, %v1153_v56, 0 }
 0x1d5   :  { %v254_v61 = vadd.f32 -0.28449672, %v252_v59  ;;  %v253_v62 = vmul.f32 %v1387_v49, %v251_v60  ;;  %v1169_v59 = vld [vmem:[%s1816_s11 + $0x18] sm:$0xf] }
 0x1d6   :  { %v993_v60 = vsel %vm183_vm1, %v1169_v59, 0 }
 0x1d7   :  { %v256_v63 = vmul.f32 %v1385_v46, %v254_v61  ;;  %v255_v0 = vadd.f32 -0.28449672, %v253_v62  ;;  %v1157_v62 = vld [vmem:[%s1816_s11 + $0xc] sm:$0xf] }
 0x1d9   :  { %v258_v2 = vadd.f32 0.2548296, %v256_v63  ;;  %v257_v3 = vmul.f32 %v1387_v49, %v255_v0  ;;  %v825_v63 = vsel %vm183_vm1, %v1157_v62, 0 }
 0x1db   :  { %v260_v4 = vmul.f32 %v1385_v46, %v258_v2  ;;  %v259_v6 = vadd.f32 0.2548296, %v257_v3  ;;  %v657_v46 = vsel %vm183_vm1, %v652_v26, 0  ;;  %v1165_v3 = vld [vmem:[%s1816_s11 + $0x14] sm:$0xf] }
 0x1dd   :  { %v270_v7 = vmul.f32 %v1389_v5, %v260_v4  ;;  %v261_v8 = vmul.f32 %v1387_v49, %v259_v6  ;;  %v937_v4 = vsel %vm183_vm1, %v1165_v3, 0  ;;  %v1173_v6 = vld [vmem:[%s1816_s11 + $0x1c] sm:$0xf] }
 0x1df   :  { %v272_v10 = vsub.f32 1.0, %v270_v7  ;;  %v271_v11 = vmul.f32 %v1391_v9, %v261_v8  ;;  %v1049_v7 = vsel %vm183_vm1, %v1173_v6, 0 }
 0x1e1   :  { %v274_v12 = vsub.f32 0.0, %v272_v10  ;;  %v273_v13 = vsub.f32 1.0, %v271_v11 }
 0x1e3   :  { %v276_v14 = vsel %vm232_vm4, %v274_v12, %v272_v10  ;;  %v275_v15 = vsub.f32 0.0, %v273_v13  ;;  %v1126_v10 = vld [vmem:[%s1811_s6] ss:$0 sm:$0xff] }
 0x1e4   :  { %v280_v16 = vadd.f32 1.0, %v276_v14 }
 0x1e5   :  { %v277_v17 = vsel %vm233_vm5, %v275_v15, %v273_v13 }
 0x1e6   :  { %v281_v20 = vadd.f32 1.0, %v277_v17  ;;  %v282_v21 = vmul.f32 %v280_v16, %v278_v18 }
 0x1e8   :  { %v283_v22 = vmul.f32 %v281_v20, %v279_v19 }
 0x1ea   :  { %v284_v24 = vpack.c.bf16 %v283_v22, %v282_v21 }
 0x1ec   :  { %1254 = vmatmul.mubr.msk.bf16.vlgmr.msra.gmra.mrb[4].mxu1 %vm324_vm6, %v284_v24  ;;  %1266 = vmatmul.mubr.msk.bf16.vlgmr.msra.gmra.mrb[8].mxu0 %vm324_vm6, %v284_v24 }
 0x1ed   :  { %1276 = vmatpush3.bf16.msra.mxu0 %v1376_v23  ;;  %1283 = vmatprep.mubr.msk.bf16.mxu0 %vm1417_vm0, %v1416_v1 }
 0x1ee   :  { %1277 = vmatprep.subr.bf16.mxu0 %v1416_v1  ;;  %1271 = vmatprep.mubr.msk.bf16.mxu1 %vm1417_vm0, %v1416_v1 }
 0x1ef   :  { %1270 = vmatpush3.bf16.msra.mxu1 %v448_v37 }
 0x1f0   :  { %1299 = vmatprep.subr.bf16.mxu1 %v1416_v1 }
 0x1f1   :  { %1278 = vmatpush3.bf16.msra.mxu0 %v1377_v25 }
 0x1f2   :  { %1279 = vmatprep.subr.bf16.mxu0 %v1416_v1 }
 0x1f5   :  { %1280 = vmatpush3.bf16.msra.mxu0 %v1378_v27 }
 0x1f6   :  { %1281 = vmatprep.subr.bf16.mxu0 %v1416_v1 }
 0x1f9   :  { %1282 = vmatpush3.bf16.msra.mxu0 %v1379_v29 }
 0x1fa   :  { %1287 = vmatprep.subr.bf16.mxu0 %v1416_v1 }
 0x1fc   :  { %1284 = vmatmul.mubr.msk.bf16.vlgmr.msra.gmra.mrb[12].mxu0 %vm324_vm6, %v514_v31 }
 0x1fd   :  { %1288 = vmatpush3.bf16.msra.mxu0 %v1380_v30  ;;  %1295 = vmatprep.mubr.msk.bf16.mxu0 %vm1417_vm0, %v1416_v1 }
 0x1fe   :  { %1289 = vmatprep.subr.bf16.mxu0 %v1416_v1 }
 0x201   :  { %1290 = vmatpush3.bf16.msra.mxu0 %v1381_v32 }
 0x202   :  { %1291 = vmatprep.subr.bf16.mxu0 %v1416_v1 }
 0x205   :  { %1292 = vmatpush3.bf16.msra.mxu0 %v1382_v33 }
 0x206   :  { %1293 = vmatprep.subr.bf16.mxu0 %v1416_v1 }
 0x209   :  { %1294 = vmatpush3.bf16.msra.mxu0 %v1383_v34 }
 0x20a   :  { %1323 = vmatprep.subr.bf16.mxu0 %v1416_v1 }
 0x20c   :  { %1296 = vmatmul.mubr.msk.bf16.vlgmr.msra.gmra.mrb[12].mxu0 %vm324_vm6, %v495_v35 }
 0x20d   :  { %1325 = vmatprep.mubr.msk.bf16.mxu0 %vm1417_vm0, %v1416_v1  ;;  %1324 = vmatpush3.bf16.msra.mxu0 %v881_v48 }
 0x20e   :  { %1335 = vmatprep.subr.bf16.mxu0 %v1416_v1 }
 0x2bf   :  { %v1634_v38 = vpop.f32.mrb[4].mxu1  ;;  %v435_v39 = vpop.f32.mrb[8].mxu0 }
 0x2c0   :  { %v1255_v28 = vpop.f32.mrb[5].mxu1  ;;  %v1267_v40 = vpop.f32.mrb[9].mxu0  ;;  %v1704_v11 = vadd.f32 %v1126_v10, %v1634_v38 }
 0x2c1   :  { %v1639_v41 = vpop.f32.mrb[6].mxu1  ;;  %v438_v42 = vpop.f32.mrb[10].mxu0 }
 0x2c2   :  { %v442_v43 = vpack.c.bf16 %v438_v42, %v435_v39  ;;  %v1256_v44 = vpop.f32.mrb[7].mxu1  ;;  %v1268_v45 = vpop.f32.mrb[11].mxu0  ;;  %v1707_v13 = vadd.f32 %v1126_v10, %v1639_v41 }
 0x2c4   :  { %1272 = vmatmul.mubr.msk.bf16.vlgmr.msra.gmra.mrb[8].mxu1 %vm179_vm3, %v442_v43 }
 0x2c5   :  { %1300 = vmatpush3.bf16.msra.mxu1 %v657_v46  ;;  %1301 = vmatprep.mubr.msk.bf16.mxu1 %vm1417_vm0, %v1416_v1 }
 0x2c6   :  { %1305 = vmatprep.subr.bf16.mxu1 %v1416_v1 }
 0x2df   :  { %v644_v49 = vpop.f32.mrb[12].mxu0 }
 0x2e0   :  { %v1297_v50 = vpop.f32.mrb[13].mxu0 }
 0x2e1   :  { %v647_v52 = vpop.f32.mrb[14].mxu0 }
 0x2e2   :  { %v651_v53 = vpack.c.bf16 %v647_v52, %v644_v49  ;;  %v1298_v54 = vpop.f32.mrb[15].mxu0 }
 0x2e4   :  { %763 = vrot.lane.b32.xlu1 %v651_v53, %s1419_s16  ;;  %707 = vrot.lane.b32.xlu0 %v651_v53, %s1418_s0 }
 0x2e5   :  { %1302 = vmatmul.mubr.msk.bf16.vlgmr.msra.gmra.mrb[12].mxu1 %vm179_vm3, %v651_v53 }
 0x2e6   :  { %1306 = vmatpush3.bf16.msra.mxu1 %v713_v55  ;;  %1307 = vmatprep.mubr.msk.bf16.mxu1 %vm1417_vm0, %v1416_v1 }
 0x2e7   :  { %1311 = vmatprep.subr.bf16.mxu1 %v1416_v1 }
 0x2e8   :  { %819 = vrot.lane.b32.xlu1 %v651_v53, %s1420_s3  ;;  %875 = vrot.lane.b32.xlu0 %v651_v53, %s1421_s2 }
 0x2ec   :  { %931 = vrot.lane.b32.xlu1 %v651_v53, %s1422_s5  ;;  %987 = vrot.lane.b32.xlu0 %v651_v53, %s1423_s7 }
 0x2f0   :  { %1043 = vrot.lane.b32.xlu1 %v651_v53, %s1424_s17 }
 0x356   :  { %v708_v58 = vpop.permute.xlu0 %707  ;;  %v764_v0 = vpop.permute.xlu1 %763 }
 0x357   :  { %1308 = vmatmul.mubr.msk.bf16.vlgmr.msra.gmra.mrb[16].mxu1 %vm179_vm3, %v708_v58 }
 0x358   :  { %1312 = vmatpush3.bf16.msra.mxu1 %v769_v57  ;;  %1313 = vmatprep.mubr.msk.bf16.mxu1 %vm1417_vm0, %v1416_v1 }
 0x359   :  { %1317 = vmatprep.subr.bf16.mxu1 %v1416_v1 }
 0x35a   :  { %v876_v61 = vpop.permute.xlu0 %875  ;;  %v820_v5 = vpop.permute.xlu1 %819 }
 0x35b   :  { %1326 = vmatmul.mubr.msk.bf16.vlgmr.msra.gmra.mrb[16].mxu0 %vm179_vm3, %v876_v61 }
 0x35c   :  { %1336 = vmatpush3.bf16.msra.mxu0 %v993_v60  ;;  %1337 = vmatprep.mubr.msk.bf16.mxu0 %vm1417_vm0, %v1416_v1 }
 0x35e   :  { %v988_v2 = vpop.permute.xlu0 %987  ;;  %v932_v8 = vpop.permute.xlu1 %931 }
 0x35f   :  { %1314 = vmatmul.mubr.msk.bf16.vlgmr.msra.gmra.mrb[20].mxu1 %vm179_vm3, %v764_v0 }
 0x360   :  { %1318 = vmatpush3.bf16.msra.mxu1 %v825_v63  ;;  %1319 = vmatprep.mubr.msk.bf16.mxu1 %vm1417_vm0, %v1416_v1 }
 0x361   :  { %1329 = vmatprep.subr.bf16.mxu1 %v1416_v1 }
 0x362   :  { %v1044_v9 = vpop.permute.xlu1 %1043 }
 0x363   :  { %1338 = vmatmul.mubr.msk.bf16.vlgmr.msra.gmra.mrb[20].mxu0 %vm179_vm3, %v988_v2 }
 0x367   :  { %1320 = vmatmul.mubr.msk.bf16.vlgmr.msra.gmra.mrb[24].mxu1 %vm179_vm3, %v820_v5 }
 0x368   :  { %1330 = vmatpush3.bf16.msra.mxu1 %v937_v4  ;;  %1331 = vmatprep.mubr.msk.bf16.mxu1 %vm1417_vm0, %v1416_v1 }
 0x369   :  { %1341 = vmatprep.subr.bf16.mxu1 %v1416_v1 }
 0x36f   :  { %1332 = vmatmul.mubr.msk.bf16.vlgmr.msra.gmra.mrb[28].mxu1 %vm179_vm3, %v932_v8 }
 0x370   :  { %1342 = vmatpush3.bf16.msra.mxu1 %v1049_v7  ;;  %1343 = vmatprep.mubr.msk.bf16.mxu1 %vm1417_vm0, %v1416_v1 }
 0x377   :  { %1344 = vmatmul.mubr.msk.bf16.vlgmr.msra.gmra.mrb[32].mxu1 %vm179_vm3, %v1044_v9 }
 0x397   :  { %v484_v12 = vpop.f32.mrb[8].mxu1 }
 0x398   :  { %v491_v14 = vadd.f32 %v484_v12, %v1704_v11  ;;  %v1273_v15 = vpop.f32.mrb[9].mxu1 }
 0x399   :  { %v487_v16 = vpop.f32.mrb[10].mxu1 }
 0x39a   :  { %493 = vst.msk [vmem:[#allocation2] sm:$0xff] %vm75_vm2, %v491_v14  ;;  %v492_v1 = vadd.f32 %v487_v16, %v1707_v13  ;;  %v1274_v17 = vpop.f32.mrb[11].mxu1 }
 0x39c   :  { %494 = vst.msk [vmem:[#allocation2 + $0x8] sm:$0xff] %vm75_vm2, %v492_v1 }
 0x3b8   :  { %v693_v18 = vpop.f32.mrb[12].mxu1 }
 0x3b9   :  { %v700_v19 = vadd.f32 %v693_v18, %v1704_v11  ;;  %v1303_v20 = vpop.f32.mrb[13].mxu1 }
 0x3ba   :  { %v696_v21 = vpop.f32.mrb[14].mxu1 }
 0x3bb   :  { %702 = vst.msk [vmem:[%s1818_s13] sm:$0xff] %vm75_vm2, %v700_v19  ;;  %v701_v22 = vadd.f32 %v696_v21, %v1707_v13  ;;  %v1304_v23 = vpop.f32.mrb[15].mxu1 }
 0x3bd   :  { %703 = vst.msk [vmem:[%s1818_s13 + $0x8] sm:$0xff] %vm75_vm2, %v701_v22 }
 0x3be   :  { %1403 = shalt.err (!%p1400_p4)
}
 0x3bf   :  { %s1404_s14 = scalar_lea.hbm %s1817_s12, 256 }
 0x3c0   :  { %p1405_p5 = scmp.ne.s32.totalorder %s1817_s12, %s1404_s14  ;;  %p1408_p6 = scmp.lt.u32.totalorder %s1404_s14, %s1817_s12 }
 0x3c2   :  { %p1410_p7 = pnand %p1408_p6, %p1405_p5 }
 0x3c4   :  { %1413 = shalt.err (!%p1410_p7)
}
 0x3c5   :  { %s1426_s5 = smov 128   ;;  %s1427_s7 = smov 8  }
 0x3c6   :  { %1108 = dma.vmem_to_hbm [thread:$0]  %s1103_s9, 256, %s1817_s12, [#allocation3], %s1426_s5, %s1426_s5, %s1427_s7  }
 0x42a   :  { %v749_v24 = vpop.f32.mrb[16].mxu1 }
 0x42b   :  { %v756_v25 = vadd.f32 %v749_v24, %v1704_v11  ;;  %v1309_v27 = vpop.f32.mrb[17].mxu1 }
 0x42c   :  { %v752_v29 = vpop.f32.mrb[18].mxu1 }
 0x42d   :  { %1151 = vst.msk [vmem:[%s1818_s13 + $0x10] sm:$0xff] %vm75_vm2, %v756_v25  ;;  %v757_v30 = vadd.f32 %v752_v29, %v1707_v13  ;;  %v1310_v31 = vpop.f32.mrb[19].mxu1 }
 0x42e   :  { %v917_v32 = vpop.f32.mrb[16].mxu0 }
 0x42f   :  { %1152 = vst.msk [vmem:[%s1818_s13 + $0x18] sm:$0xff] %vm75_vm2, %v757_v30  ;;  %v924_v33 = vadd.f32 %v917_v32, %v1704_v11  ;;  %v1327_v34 = vpop.f32.mrb[17].mxu0 }
 0x430   :  { %v920_v35 = vpop.f32.mrb[18].mxu0 }
 0x431   :  { %1163 = vst.msk [vmem:[%s1818_s13 + $0x40] sm:$0xff] %vm75_vm2, %v924_v33  ;;  %v925_v36 = vadd.f32 %v920_v35, %v1707_v13  ;;  %v1328_v37 = vpop.f32.mrb[19].mxu0 }
 0x432   :  { %v805_v38 = vpop.f32.mrb[20].mxu1 }
 0x433   :  { %1164 = vst.msk [vmem:[%s1818_s13 + $0x48] sm:$0xff] %vm75_vm2, %v925_v36  ;;  %v812_v39 = vadd.f32 %v805_v38, %v1704_v11  ;;  %v1315_v26 = vpop.f32.mrb[21].mxu1 }
 0x434   :  { %v808_v28 = vpop.f32.mrb[22].mxu1 }
 0x435   :  { %1155 = vst.msk [vmem:[%s1818_s13 + $0x20] sm:$0xff] %vm75_vm2, %v812_v39  ;;  %v813_v40 = vadd.f32 %v808_v28, %v1707_v13  ;;  %v1316_v41 = vpop.f32.mrb[23].mxu1 }
 0x436   :  { %v1029_v42 = vpop.f32.mrb[20].mxu0 }
 0x437   :  { %1156 = vst.msk [vmem:[%s1818_s13 + $0x28] sm:$0xff] %vm75_vm2, %v813_v40  ;;  %v1036_v43 = vadd.f32 %v1029_v42, %v1704_v11  ;;  %v1339_v44 = vpop.f32.mrb[21].mxu0 }
 0x438   :  { %v1032_v45 = vpop.f32.mrb[22].mxu0 }
 0x439   :  { %1171 = vst.msk [vmem:[%s1818_s13 + $0x60] sm:$0xff] %vm75_vm2, %v1036_v43  ;;  %v1037_v46 = vadd.f32 %v1032_v45, %v1707_v13  ;;  %v1340_v47 = vpop.f32.mrb[23].mxu0 }
 0x43a   :  { %v861_v48 = vpop.f32.mrb[24].mxu1 }
 0x43b   :  { %1172 = vst.msk [vmem:[%s1818_s13 + $0x68] sm:$0xff] %vm75_vm2, %v1037_v46  ;;  %v868_v49 = vadd.f32 %v861_v48, %v1704_v11  ;;  %v1321_v50 = vpop.f32.mrb[25].mxu1 }
 0x43c   :  { %v864_v51 = vpop.f32.mrb[26].mxu1 }
 0x43d   :  { %1159 = vst.msk [vmem:[%s1818_s13 + $0x30] sm:$0xff] %vm75_vm2, %v868_v49  ;;  %v869_v52 = vadd.f32 %v864_v51, %v1707_v13  ;;  %v1322_v53 = vpop.f32.mrb[27].mxu1 }
 0x43f   :  { %1160 = vst.msk [vmem:[%s1818_s13 + $0x38] sm:$0xff] %vm75_vm2, %v869_v52 }
 0x442   :  { %v973_v54 = vpop.f32.mrb[28].mxu1 }
 0x443   :  { %v980_v55 = vadd.f32 %v973_v54, %v1704_v11  ;;  %v1333_v56 = vpop.f32.mrb[29].mxu1 }
 0x444   :  { %v976_v57 = vpop.f32.mrb[30].mxu1 }
 0x445   :  { %1167 = vst.msk [vmem:[%s1818_s13 + $0x50] sm:$0xff] %vm75_vm2, %v980_v55  ;;  %v981_v58 = vadd.f32 %v976_v57, %v1707_v13  ;;  %v1334_v59 = vpop.f32.mrb[31].mxu1 }
 0x447   :  { %1168 = vst.msk [vmem:[%s1818_s13 + $0x58] sm:$0xff] %vm75_vm2, %v981_v58 }
 0x44a   :  { %v1085_v60 = vpop.f32.mrb[32].mxu1 }
 0x44b   :  { %v1092_v61 = vadd.f32 %v1085_v60, %v1704_v11  ;;  %v1345_v62 = vpop.f32.mrb[33].mxu1 }
 0x44c   :  { %v1088_v63 = vpop.f32.mrb[34].mxu1 }
 0x44d   :  { %1175 = vst.msk [vmem:[%s1818_s13 + $0x70] sm:$0xff] %vm75_vm2, %v1092_v61  ;;  %v1093_v0 = vadd.f32 %v1088_v63, %v1707_v13  ;;  %v1346_v2 = vpop.f32.mrb[35].mxu1 }
 0x44f   :  { %1176 = vst.msk [vmem:[%s1818_s13 + $0x78] sm:$0xff] %vm75_vm2, %v1093_v0 }
 0x450   :  { %1414 = dma.done.wait [#allocation3], 256  }
 0x451   :  { %1415 = vsyncadd [#allocation3], 4294967040 }
 0x452   :  { %1116 = vsyncpa [#allocation3], 1 }

</bundles_post_ra>
